<compile_context>
chip_gen: v6e
topology: v6e:2x2x1
jax: 0.10.0
libtpu: 0.0.40
codegen_flags: <defaults>
</compile_context>

<pallas_src>
import functools

import jax
import jax.numpy as jnp
from jax import lax
from jax.experimental import pallas as pl
from jax.experimental.pallas import tpu as pltpu

BN_EPS = 1e-5
_H_OFF = 8  # sublane-aligned start of the interior rows inside the padded scratch


# ----------------------------------------------------------------------------
# Fused SpatialSELayer3D kernel
# ----------------------------------------------------------------------------
def _spatial_se_kernel(x_ref, rp_ref, c1w_ref, c2w_ref, shift_ref, o_ref, sq_ref,
                       *, D, H, W, C):
    n_dh, n_wc = x_ref.shape
    x = x_ref[...].astype(jnp.float32)                                   # (D*H, W*C)

    # --- pre_conv: 1x1x1 conv (C -> 1) + folded BN + ReLU -------------------
    # One lane-dense matmul both reduces over C and re-broadcasts the result
    # across the C lanes of every W group, so pb[dh, w*C + c] == p[dh, w].
    # The BN scale is pre-folded into rp, so only a shift remains here.
    pb = jnp.dot(x, rp_ref[...], preferred_element_type=jnp.float32)     # (D*H, W*C)
    pb = jnp.maximum(pb + shift_ref[0], 0.0)

    # --- conv1: (1,1,3) conv along W + folded BN + ReLU ----------------------
    # 3-tap stencil as masked lane rotations by one W-group (C lanes); BN scale
    # is pre-folded into the taps.
    lane = lax.broadcasted_iota(jnp.int32, (n_dh, n_wc), 1)
    p_m = jnp.where(lane >= C,
                    pltpu.roll(pb, shift=C, axis=1), 0.0)                # p[w-1]
    p_p = jnp.where(lane < n_wc - C,
                    pltpu.roll(pb, shift=n_wc - C, axis=1), 0.0)         # p[w+1]
    qb = c1w_ref[0] * p_m + c1w_ref[1] * pb + c1w_ref[2] * p_p
    qb = jnp.maximum(qb + shift_ref[1], 0.0)

    # --- conv2: (3,3,1) conv over (D, H) + folded BN + ReLU ------------------
    # Zero-padded VMEM scratch.  For each of the 3 D offsets a single band
    # (D, H+2, W*C) is read from the scratch and the 3 H taps are taken as
    # in-register slices of that band, so only 3 VMEM reads are issued.
    # The interior is stored at a sublane-aligned offset so the store never
    # straddles a tile boundary.  The halo is re-zeroed every grid step so the
    # kernel stays correct when the batch axis is sharded across TensorCores.
    sq_ref[...] = jnp.zeros_like(sq_ref)
    sq_ref[1:D + 1, _H_OFF:_H_OFF + H, :] = qb.reshape(D, H, n_wc)
    acc = jnp.zeros((D, H, n_wc), jnp.float32)
    for kd in range(3):
        band = sq_ref[kd:kd + D, _H_OFF - 1:_H_OFF + H + 1, :]           # (D, H+2, WC)
        acc = acc + (c2w_ref[kd * 3 + 0] * band[:, 0:H, :]
                     + c2w_ref[kd * 3 + 1] * band[:, 1:H + 1, :]
                     + c2w_ref[kd * 3 + 2] * band[:, 2:H + 2, :])
    rb = jnp.maximum(acc + shift_ref[2], 0.0)

    # --- sigmoid gate (already broadcast across the C lanes) + excitation ----
    gate = jax.nn.sigmoid(rb).reshape(n_dh, n_wc)
    o_ref[...] = (x * gate).astype(o_ref.dtype)


def fold_bn(gamma, beta, mean, var, conv_bias, eps=BN_EPS):
    scale = gamma / jnp.sqrt(var + eps)
    shift = beta + (conv_bias - mean) * scale
    return scale, shift


def spatial_se3d_pallas(x, p):
    """x: (B, D, H, W, C) channels-last; p: parameter dict (see make_params)."""
    B, D, H, W, C = x.shape
    n_dh, n_wc = D * H, W * C

    # Fold conv biases + inference-mode BatchNorm into per-stage scale/shift,
    # then fold the scales directly into the conv weights / projection operator.
    s0, t0 = fold_bn(p['pre_bn_g'], p['pre_bn_b'], p['pre_bn_m'], p['pre_bn_v'],
                     p['pre_b'])
    s1, t1 = fold_bn(p['c1_bn_g'], p['c1_bn_b'], p['c1_bn_m'], p['c1_bn_v'],
                     p['c1_b'])
    s2, t2 = fold_bn(p['c2_bn_g'], p['c2_bn_b'], p['c2_bn_m'], p['c2_bn_v'],
                     p['c2_b'])
    shifts = jnp.concatenate([t0, t1, t2]).astype(jnp.float32)          # (3,)

    # Reduce-and-broadcast operator for the 1x1x1 conv (block-diagonal in W):
    #   rp[w*C + c, w'*C + c'] = pre_w[c] * s0 * (w == w')
    # Size (W*C)^2 — independent of D and H.
    rp = (jnp.eye(W, dtype=jnp.float32)[:, None, :, None]
          * p['pre_w'].astype(jnp.float32)[None, :, None, None]
          * jnp.ones((1, 1, 1, C), jnp.float32)).reshape(n_wc, n_wc)
    rp = rp * s0[0]

    c1w = (p['c1_w'].astype(jnp.float32) * s1[0])                        # (3,)
    c2w = (p['c2_w'].reshape(9).astype(jnp.float32) * s2[0])             # (9,)

    x2 = x.reshape(B, n_dh, n_wc)                    # lane-dense view (metadata only)
    kernel = functools.partial(_spatial_se_kernel, D=D, H=H, W=W, C=C)
    out2 = pl.pallas_call(
        kernel,
        out_shape=jax.ShapeDtypeStruct((B, n_dh, n_wc), x.dtype),
        grid=(B,),
        in_specs=[
            pl.BlockSpec((None, n_dh, n_wc), lambda b: (b, 0, 0)),
            pl.BlockSpec((n_wc, n_wc), lambda b: (0, 0)),
            pl.BlockSpec(memory_space=pltpu.MemorySpace.SMEM),   # folded c1 taps
            pl.BlockSpec(memory_space=pltpu.MemorySpace.SMEM),   # folded c2 taps
            pl.BlockSpec(memory_space=pltpu.MemorySpace.SMEM),   # per-stage shifts
        ],
        out_specs=pl.BlockSpec((None, n_dh, n_wc), lambda b: (b, 0, 0)),
        scratch_shapes=[pltpu.VMEM((D + 2, H + 2 * _H_OFF, n_wc), jnp.float32)],
        compiler_params=pltpu.CompilerParams(dimension_semantics=("parallel",)),
    )(x2, rp, c1w, c2w, shifts)
    return out2.reshape(B, D, H, W, C)


# ----------------------------------------------------------------------------
# Parameters + pure-JAX reference (correctness check only)
# ----------------------------------------------------------------------------
def make_params(key, C):
    keys = iter(jax.random.split(key, 24))

    def nrm(shape, s=0.1):
        return (s * jax.random.normal(next(keys), shape)).astype(jnp.float32)

    def uni(shape):
        return jax.random.uniform(next(keys), shape, minval=0.5,
                                  maxval=1.5).astype(jnp.float32)

    p = {}

    def add_bn(prefix):
        p[prefix + '_g'] = uni((1,))
        p[prefix + '_b'] = nrm((1,))
        p[prefix + '_m'] = nrm((1,))
        p[prefix + '_v'] = uni((1,))

    p['pre_w'] = nrm((C,), 0.3); p['pre_b'] = nrm(()); add_bn('pre_bn')
    p['c1_w'] = nrm((3,), 0.5); p['c1_b'] = nrm(()); add_bn('c1_bn')
    p['c2_w'] = nrm((3, 3), 0.5); p['c2_b'] = nrm(()); add_bn('c2_bn')
    return p


def spatial_se3d_ref(x, p):
    def bn(h, pre):
        g, b, m, v = p[pre + '_g'], p[pre + '_b'], p[pre + '_m'], p[pre + '_v']
        return (h - m) * (g / jnp.sqrt(v + BN_EPS)) + b

    def conv(h, w, b, pad):
        return lax.conv_general_dilated(
            h, w, window_strides=(1, 1, 1), padding=pad,
            dimension_numbers=('NDHWC', 'DHWIO', 'NDHWC'),
            precision=lax.Precision.HIGHEST) + b

    relu = lambda a: jnp.maximum(a, 0.0)
    pre = relu(bn(jnp.sum(x * p['pre_w'], axis=-1, keepdims=True) + p['pre_b'],
                  'pre_bn'))
    q = relu(bn(conv(pre, p['c1_w'].reshape(1, 1, 3, 1, 1), p['c1_b'],
                     ((0, 0), (0, 0), (1, 1))), 'c1_bn'))
    r = relu(bn(conv(q, p['c2_w'].reshape(3, 3, 1, 1, 1), p['c2_b'],
                     ((1, 1), (1, 1), (0, 0))), 'c2_bn'))
    return x * jax.nn.sigmoid(r)


if __name__ == "__main__":
    B, C, D, H, W = 2, 16, 8, 8, 8          # W * C = 128 -> fully lane-dense
    key = jax.random.PRNGKey(0)
    kx, kp = jax.random.split(key)
    x = jax.random.normal(kx, (B, D, H, W, C), dtype=jnp.float32)
    params = make_params(kp, C)

    out = jax.jit(spatial_se3d_pallas)(x, params)
    out = jax.block_until_ready(out)

    ref = spatial_se3d_ref(x, params)
    err = float(jnp.max(jnp.abs(out - ref)))
    assert out.shape == (B, D, H, W, C)
    assert bool(jnp.all(jnp.isfinite(out)))
    assert err < 1e-3, f"max abs err {err}"
    print("KERNEL_OK")
</pallas_src>

<mosaic_0001>
module attributes {stable_mosaic.version = 11 : i64} {
  func.func @_spatial_se_kernel(%arg0: i32, %arg1: memref<1x64x128xf32, #tpu.memory_space<vmem>>, %arg2: memref<128x128xf32, #tpu.memory_space<vmem>>, %arg3: memref<3xf32, #tpu.memory_space<smem>>, %arg4: memref<9xf32, #tpu.memory_space<smem>>, %arg5: memref<3xf32, #tpu.memory_space<smem>>, %arg6: memref<1x64x128xf32, #tpu.memory_space<vmem>>, %arg7: memref<10x24x128xf32, #tpu.memory_space<vmem>>) attributes {dimension_semantics = [#tpu.dimension_semantics<parallel>], iteration_bounds = array<i64: 2>, scalar_prefetch = 0 : i64, scratch_operands = 1 : i64, tpu.core_type = #tpu.core_type<tc>, window_params = [{transform_indices = @transform_0, window_bounds = array<i64: 1, 64, 128>}, {pipeline_mode = #tpu.pipeline_mode<synchronous>, transform_indices = @transform_1, window_bounds = array<i64: 128, 128>}, {transform_indices = @transform_2, window_bounds = array<i64: 3>}, {transform_indices = @transform_3, window_bounds = array<i64: 9>}, {transform_indices = @transform_4, window_bounds = array<i64: 3>}, {transform_indices = @transform_5, window_bounds = array<i64: 1, 64, 128>}]} {
    %c0 = arith.constant 0 : index
    %c0_0 = arith.constant 0 : index
    %c0_1 = arith.constant 0 : index
    %0 = vector.load %arg1[%c0, %c0_0, %c0_1] : memref<1x64x128xf32, #tpu.memory_space<vmem>>, vector<1x64x128xf32>
    %1 = vector.shape_cast %0 : vector<1x64x128xf32> to vector<64x128xf32>
    %c0_2 = arith.constant 0 : index
    %c0_3 = arith.constant 0 : index
    %2 = vector.load %arg2[%c0_2, %c0_3] : memref<128x128xf32, #tpu.memory_space<vmem>>, vector<128x128xf32>
    %cst = arith.constant dense<0.000000e+00> : vector<64x128xf32>
    %3 = tpu.matmul %1, %2, %cst {dimension_numbers = #tpu.dot_dimension_numbers<[1], [0], [0], [1], [0, 0, 1, 1], [], []>} : vector<64x128xf32>, vector<128x128xf32>, vector<64x128xf32> -> vector<64x128xf32>
    %c0_4 = arith.constant 0 : index
    %4 = memref.load %arg5[%c0_4] : memref<3xf32, #tpu.memory_space<smem>>
    %5 = vector.broadcast %4 : f32 to vector<64x128xf32>
    %6 = arith.addf %3, %5 : vector<64x128xf32>
    %cst_5 = arith.constant 0.000000e+00 : f32
    %7 = vector.broadcast %cst_5 : f32 to vector<64x128xf32>
    %8 = arith.maximumf %6, %7 : vector<64x128xf32>
    %9 = tpu.iota {dimensions = array<i32: 1>} : vector<64x128xi32>
    %c16_i32 = arith.constant 16 : i32
    %10 = vector.broadcast %c16_i32 : i32 to vector<64x128xi32>
    %11 = arith.cmpi sge, %9, %10 : vector<64x128xi32>
    %c16_i32_6 = arith.constant 16 : i32
    %12 = tpu.dynamic_rotate %8 by %c16_i32_6 dim 1 : vector<64x128xf32>, i32 -> vector<64x128xf32>
    %cst_7 = arith.constant 0.000000e+00 : f32
    %13 = vector.broadcast %cst_7 : f32 to vector<64x128xf32>
    %14 = arith.select %11, %12, %13 : vector<64x128xi1>, vector<64x128xf32>
    %c112_i32 = arith.constant 112 : i32
    %15 = vector.broadcast %c112_i32 : i32 to vector<64x128xi32>
    %16 = arith.cmpi slt, %9, %15 : vector<64x128xi32>
    %c112_i32_8 = arith.constant 112 : i32
    %17 = tpu.dynamic_rotate %8 by %c112_i32_8 dim 1 : vector<64x128xf32>, i32 -> vector<64x128xf32>
    %cst_9 = arith.constant 0.000000e+00 : f32
    %18 = vector.broadcast %cst_9 : f32 to vector<64x128xf32>
    %19 = arith.select %16, %17, %18 : vector<64x128xi1>, vector<64x128xf32>
    %c0_10 = arith.constant 0 : index
    %20 = memref.load %arg3[%c0_10] : memref<3xf32, #tpu.memory_space<smem>>
    %21 = vector.broadcast %20 : f32 to vector<64x128xf32>
    %22 = arith.mulf %21, %14 : vector<64x128xf32>
    %c1 = arith.constant 1 : index
    %23 = memref.load %arg3[%c1] : memref<3xf32, #tpu.memory_space<smem>>
    %24 = vector.broadcast %23 : f32 to vector<64x128xf32>
    %25 = arith.mulf %24, %8 : vector<64x128xf32>
    %26 = arith.addf %22, %25 : vector<64x128xf32>
    %c2 = arith.constant 2 : index
    %27 = memref.load %arg3[%c2] : memref<3xf32, #tpu.memory_space<smem>>
    %28 = vector.broadcast %27 : f32 to vector<64x128xf32>
    %29 = arith.mulf %28, %19 : vector<64x128xf32>
    %30 = arith.addf %26, %29 : vector<64x128xf32>
    %c1_11 = arith.constant 1 : index
    %31 = memref.load %arg5[%c1_11] : memref<3xf32, #tpu.memory_space<smem>>
    %32 = vector.broadcast %31 : f32 to vector<64x128xf32>
    %33 = arith.addf %30, %32 : vector<64x128xf32>
    %cst_12 = arith.constant 0.000000e+00 : f32
    %34 = vector.broadcast %cst_12 : f32 to vector<64x128xf32>
    %35 = arith.maximumf %33, %34 : vector<64x128xf32>
    %cst_13 = arith.constant 0.000000e+00 : f32
    %36 = vector.broadcast %cst_13 : f32 to vector<10x24x128xf32>
    %c0_14 = arith.constant 0 : index
    %c0_15 = arith.constant 0 : index
    %c0_16 = arith.constant 0 : index
    %37 = vector.load %arg7[%c0_14, %c0_15, %c0_16] : memref<10x24x128xf32, #tpu.memory_space<vmem>>, vector<10x24x128xf32>
    tpu.vector_store %arg7[%c0_14, %c0_15, %c0_16], %36 {strides = array<i32>} : memref<10x24x128xf32, #tpu.memory_space<vmem>>, vector<10x24x128xf32>,
    %38 = vector.shape_cast %35 : vector<64x128xf32> to vector<8x8x128xf32>
    %c1_17 = arith.constant 1 : index
    %c8 = arith.constant 8 : index
    %c0_18 = arith.constant 0 : index
    %39 = vector.load %arg7[%c1_17, %c8, %c0_18] : memref<10x24x128xf32, #tpu.memory_space<vmem>>, vector<8x8x128xf32>
    tpu.vector_store %arg7[%c1_17, %c8, %c0_18], %38 {strides = array<i32>} : memref<10x24x128xf32, #tpu.memory_space<vmem>>, vector<8x8x128xf32>,
    %cst_19 = arith.constant 0.000000e+00 : f32
    %40 = vector.broadcast %cst_19 : f32 to vector<8x8x128xf32>
    %c0_20 = arith.constant 0 : index
    %c7 = arith.constant 7 : index
    %c0_21 = arith.constant 0 : index
    %41 = vector.load %arg7[%c0_20, %c7, %c0_21] : memref<10x24x128xf32, #tpu.memory_space<vmem>>, vector<8x10x128xf32>
    %c0_22 = arith.constant 0 : index
    %42 = memref.load %arg4[%c0_22] : memref<9xf32, #tpu.memory_space<smem>>
    %43 = vector.extract_strided_slice %41 {offsets = [0, 0, 0], sizes = [8, 8, 128], strides = [1, 1, 1]} : vector<8x10x128xf32> to vector<8x8x128xf32>
    %44 = vector.broadcast %42 : f32 to vector<8x8x128xf32>
    %45 = arith.mulf %44, %43 : vector<8x8x128xf32>
    %c1_23 = arith.constant 1 : index
    %46 = memref.load %arg4[%c1_23] : memref<9xf32, #tpu.memory_space<smem>>
    %47 = vector.extract_strided_slice %41 {offsets = [0, 1, 0], sizes = [8, 8, 128], strides = [1, 1, 1]} : vector<8x10x128xf32> to vector<8x8x128xf32>
    %48 = vector.broadcast %46 : f32 to vector<8x8x128xf32>
    %49 = arith.mulf %48, %47 : vector<8x8x128xf32>
    %50 = arith.addf %45, %49 : vector<8x8x128xf32>
    %c2_24 = arith.constant 2 : index
    %51 = memref.load %arg4[%c2_24] : memref<9xf32, #tpu.memory_space<smem>>
    %52 = vector.extract_strided_slice %41 {offsets = [0, 2, 0], sizes = [8, 8, 128], strides = [1, 1, 1]} : vector<8x10x128xf32> to vector<8x8x128xf32>
    %53 = vector.broadcast %51 : f32 to vector<8x8x128xf32>
    %54 = arith.mulf %53, %52 : vector<8x8x128xf32>
    %55 = arith.addf %50, %54 : vector<8x8x128xf32>
    %56 = arith.addf %40, %55 : vector<8x8x128xf32>
    %c1_25 = arith.constant 1 : index
    %c7_26 = arith.constant 7 : index
    %c0_27 = arith.constant 0 : index
    %57 = vector.load %arg7[%c1_25, %c7_26, %c0_27] : memref<10x24x128xf32, #tpu.memory_space<vmem>>, vector<8x10x128xf32>
    %c3 = arith.constant 3 : index
    %58 = memref.load %arg4[%c3] : memref<9xf32, #tpu.memory_space<smem>>
    %59 = vector.extract_strided_slice %57 {offsets = [0, 0, 0], sizes = [8, 8, 128], strides = [1, 1, 1]} : vector<8x10x128xf32> to vector<8x8x128xf32>
    %60 = vector.broadcast %58 : f32 to vector<8x8x128xf32>
    %61 = arith.mulf %60, %59 : vector<8x8x128xf32>
    %c4 = arith.constant 4 : index
    %62 = memref.load %arg4[%c4] : memref<9xf32, #tpu.memory_space<smem>>
    %63 = vector.extract_strided_slice %57 {offsets = [0, 1, 0], sizes = [8, 8, 128], strides = [1, 1, 1]} : vector<8x10x128xf32> to vector<8x8x128xf32>
    %64 = vector.broadcast %62 : f32 to vector<8x8x128xf32>
    %65 = arith.mulf %64, %63 : vector<8x8x128xf32>
    %66 = arith.addf %61, %65 : vector<8x8x128xf32>
    %c5 = arith.constant 5 : index
    %67 = memref.load %arg4[%c5] : memref<9xf32, #tpu.memory_space<smem>>
    %68 = vector.extract_strided_slice %57 {offsets = [0, 2, 0], sizes = [8, 8, 128], strides = [1, 1, 1]} : vector<8x10x128xf32> to vector<8x8x128xf32>
    %69 = vector.broadcast %67 : f32 to vector<8x8x128xf32>
    %70 = arith.mulf %69, %68 : vector<8x8x128xf32>
    %71 = arith.addf %66, %70 : vector<8x8x128xf32>
    %72 = arith.addf %56, %71 : vector<8x8x128xf32>
    %c2_28 = arith.constant 2 : index
    %c7_29 = arith.constant 7 : index
    %c0_30 = arith.constant 0 : index
    %73 = vector.load %arg7[%c2_28, %c7_29, %c0_30] : memref<10x24x128xf32, #tpu.memory_space<vmem>>, vector<8x10x128xf32>
    %c6 = arith.constant 6 : index
    %74 = memref.load %arg4[%c6] : memref<9xf32, #tpu.memory_space<smem>>
    %75 = vector.extract_strided_slice %73 {offsets = [0, 0, 0], sizes = [8, 8, 128], strides = [1, 1, 1]} : vector<8x10x128xf32> to vector<8x8x128xf32>
    %76 = vector.broadcast %74 : f32 to vector<8x8x128xf32>
    %77 = arith.mulf %76, %75 : vector<8x8x128xf32>
    %c7_31 = arith.constant 7 : index
    %78 = memref.load %arg4[%c7_31] : memref<9xf32, #tpu.memory_space<smem>>
    %79 = vector.extract_strided_slice %73 {offsets = [0, 1, 0], sizes = [8, 8, 128], strides = [1, 1, 1]} : vector<8x10x128xf32> to vector<8x8x128xf32>
    %80 = vector.broadcast %78 : f32 to vector<8x8x128xf32>
    %81 = arith.mulf %80, %79 : vector<8x8x128xf32>
    %82 = arith.addf %77, %81 : vector<8x8x128xf32>
    %c8_32 = arith.constant 8 : index
    %83 = memref.load %arg4[%c8_32] : memref<9xf32, #tpu.memory_space<smem>>
    %84 = vector.extract_strided_slice %73 {offsets = [0, 2, 0], sizes = [8, 8, 128], strides = [1, 1, 1]} : vector<8x10x128xf32> to vector<8x8x128xf32>
    %85 = vector.broadcast %83 : f32 to vector<8x8x128xf32>
    %86 = arith.mulf %85, %84 : vector<8x8x128xf32>
    %87 = arith.addf %82, %86 : vector<8x8x128xf32>
    %88 = arith.addf %72, %87 : vector<8x8x128xf32>
    %c2_33 = arith.constant 2 : index
    %89 = memref.load %arg5[%c2_33] : memref<3xf32, #tpu.memory_space<smem>>
    %90 = vector.broadcast %89 : f32 to vector<8x8x128xf32>
    %91 = arith.addf %88, %90 : vector<8x8x128xf32>
    %cst_34 = arith.constant 0.000000e+00 : f32
    %92 = vector.broadcast %cst_34 : f32 to vector<8x8x128xf32>
    %93 = arith.maximumf %91, %92 : vector<8x8x128xf32>
    %94 = arith.negf %93 : vector<8x8x128xf32>
    %95 = math.exp %94 : vector<8x8x128xf32>
    %cst_35 = arith.constant 1.000000e+00 : f32
    %96 = vector.broadcast %cst_35 : f32 to vector<8x8x128xf32>
    %97 = arith.addf %96, %95 : vector<8x8x128xf32>
    %98 = arith.divf %96, %97 : vector<8x8x128xf32>
    %99 = vector.shape_cast %98 : vector<8x8x128xf32> to vector<64x128xf32>
    %100 = arith.mulf %1, %99 : vector<64x128xf32>
    %c0_36 = arith.constant 0 : index
    %c0_37 = arith.constant 0 : index
    %c0_38 = arith.constant 0 : index
    %101 = vector.load %arg6[%c0_36, %c0_37, %c0_38] : memref<1x64x128xf32, #tpu.memory_space<vmem>>, vector<1x64x128xf32>
    %102 = vector.shape_cast %101 : vector<1x64x128xf32> to vector<64x128xf32>
    %103 = vector.shape_cast %100 : vector<64x128xf32> to vector<1x64x128xf32>
    tpu.vector_store %arg6[%c0_36, %c0_37, %c0_38], %103 {strides = array<i32>} : memref<1x64x128xf32, #tpu.memory_space<vmem>>, vector<1x64x128xf32>,
    return
  }
  func.func @transform_0(%arg0: i32) -> (i32, i32, i32) {
    %c0_i32 = arith.constant 0 : i32
    %c0_i32_0 = arith.constant 0 : i32
    %c0_i32_1 = arith.constant 0 : i32
    return %arg0, %c0_i32, %c0_i32_0 : i32, i32, i32
  }
  func.func @transform_1(%arg0: i32) -> (i32, i32) {
    %c0_i32 = arith.constant 0 : i32
    %c0_i32_0 = arith.constant 0 : i32
    %c0_i32_1 = arith.constant 0 : i32
    return %c0_i32, %c0_i32_0 : i32, i32
  }
  func.func @transform_2(%arg0: i32) -> i32 {
    %c0_i32 = arith.constant 0 : i32
    %c0_i32_0 = arith.constant 0 : i32
    return %c0_i32 : i32
  }
  func.func @transform_3(%arg0: i32) -> i32 {
    %c0_i32 = arith.constant 0 : i32
    %c0_i32_0 = arith.constant 0 : i32
    return %c0_i32 : i32
  }
  func.func @transform_4(%arg0: i32) -> i32 {
    %c0_i32 = arith.constant 0 : i32
    %c0_i32_0 = arith.constant 0 : i32
    return %c0_i32 : i32
  }
  func.func @transform_5(%arg0: i32) -> (i32, i32, i32) {
    %c0_i32 = arith.constant 0 : i32
    %c0_i32_0 = arith.constant 0 : i32
    %c0_i32_1 = arith.constant 0 : i32
    return %arg0, %c0_i32, %c0_i32_0 : i32, i32, i32
  }
}

</mosaic_0001>

<bundles_post_ra>
// kernel: spatial_se3d_pallas.1
= control target key start
LH: loop header
LB: loop body
LE: loop exit
PB: predicated region body
PF: predicated region fallthrough
CT: control target
= control target key end

     0   :  { %10 = vsyncpa [#allocation4], 0  ;;  %s2264_s0 = inlined_call_operand.vmem [shape: f32[2,64,128], index: 0, kind: input, shape index: {}]   ;;  %s2265_s1 = inlined_call_operand.vmem [shape: f32[128,128], index: 1, kind: input, shape index: {}]   ;;  %s2266_s2 = inlined_call_operand.vmem [shape: f32[3], index: 2, kind: input, shape index: {}]   ;;  %s2267_s3 = inlined_call_operand.vmem [shape: f32[9], index: 3, kind: input, shape index: {}]   ;;  %s2268_s4 = inlined_call_operand.vmem [shape: f32[3], index: 4, kind: input, shape index: {}]   ;;  %s2269_s5 = inlined_call_operand.vmem [shape: f32[2,64,128], index: 5, kind: output, shape index: {}]  }
   0x1   :  { %11 = vsyncpa [#allocation6], 0  ;;  %s1592_s18 = smov 0  }
   0x2 LB: > { %s1598_s19 = sadd.s32 4294967295, %s1554_s18   ;;  %p1277_p0 = scmp.ge.s32.totalorder %s1554_s18, 1  ;;  %s1554_s18 = sphi %s1592_s18, %s17_s18  }
   0x3   : > { %p158_p1 = scmp.lt.s32.totalorder %s1554_s18, 3  ;;  %s185_s22 = sshll.u32 %s2267_s3, 4  ;;  %s186_s22 = int_to_ptr.vmem [resolvable:$true] %s185_s22 }
   0x4   : > { %p2270_p3 = scmp.eq.s32.totalorder %s1598_s19, 0  ;;  %s174_s26 = sshll.u32 %s2266_s2, 4  ;;  %s175_s26 = int_to_ptr.vmem [resolvable:$true] %s174_s26 }
   0x5   : > { %p1605_p2 = pnand %p1277_p0, %p158_p1  ;;  %s196_s29 = sshll.u32 %s2268_s4, 4  ;;  %s1624_s29 = int_to_ptr.vmem [resolvable:$true] %s196_s29 }
   0x6   : > { %s1495_s6 = scalar_lea.vmem %s186_s22, 16  ;;  %p1503_p10 = scmp.lt.s32.totalorder %s186_s22, %s186_s22 }
   0x7   : > { %s2272_s23 = scalar_select %p1605_p2, 1, 0 }
   0x8   : > { %p1426_p4 = pneg %p1605_p2  ;;  %p1496_p6 = scmp.ne.s32.totalorder %s186_s22, %s1495_s6 }
   0x9   : > { %p1504_p11 = scmp.lt.s32.totalorder %s1495_s6, %s1495_s6 }
   0xa   : > { %p1620_p5 = pnand %p2270_p3, %p1426_p4 }
   0xb   : > { %p1505_p12 = por %p1504_p11, %p1503_p10 }
   0xc   : > { %p1497_p7 = pneg %p1620_p5 }
   0xe   : > { %p1498_p8 = pnand %p1497_p7, %p1496_p6 }
  0x10   : > { %p1499_p9 = pneg %p1498_p8 }
  0x12   : > { %p1506_p13 = pnand %p1505_p12, %p1499_p9 }
  0x14   : > { %1509 = shalt.err (!%p1506_p13)
}
  0x15   : > { %s1556_s7 = smov [#allocation5]   ;;  %s1510_s8 = scalar_lea.vmem %s175_s26, 16 }
  0x16   : > { %1432 = dma.vmem_to_smem (!%p1620_p5), %s186_s22, 16, %s1556_s7, [#allocation6]  }
  0x17   : > { %p1511_p0 = scmp.ne.s32.totalorder %s175_s26, %s1510_s8  ;;  %p1518_p3 = scmp.lt.s32.totalorder %s175_s26, %s175_s26 }
  0x18   : > { %p1519_p2 = scmp.lt.s32.totalorder %s1510_s8, %s1510_s8 }
  0x19   : > { %p1513_p1 = pnand %p1511_p0, %p1497_p7 }
  0x1a   : > { %p1520_p6 = por %p1519_p2, %p1518_p3 }
  0x1b   : > { %p1514_p4 = pneg %p1513_p1 }
  0x1d   : > { %p1521_p8 = pnand %p1520_p6, %p1514_p4 }
  0x1f   : > { %1524 = shalt.err (!%p1521_p8)
}
  0x20   : > { %s1557_s9 = smov [#allocation3]   ;;  %s1525_s10 = scalar_lea.vmem %s1624_s29, 16 }
  0x21   : > { %1429 = dma.vmem_to_smem (!%p1620_p5), %s175_s26, 16, %s1557_s9, [#allocation4]  }
  0x22   : > { %p1526_p9 = scmp.ne.s32.totalorder %s1624_s29, %s1525_s10  ;;  %p1533_p12 = scmp.lt.s32.totalorder %s1624_s29, %s1624_s29 }
  0x23   : > { %p1534_p13 = scmp.lt.s32.totalorder %s1525_s10, %s1525_s10 }
  0x24   : > { %p1528_p10 = pnand %p1526_p9, %p1497_p7 }
  0x25   : > { %p1535_p2 = por %p1534_p13, %p1533_p12 }
  0x26   : > { %p1529_p11 = pneg %p1528_p10 }
  0x28   : > { %p1536_p3 = pnand %p1535_p2, %p1529_p11 }
  0x2a   : > { %1539 = shalt.err (!%p1536_p3)
}
  0x2b   : > { %s1558_s11 = smov [#allocation7]   ;;  %p2274_p0 = scmp.ne.s32.totalorder %s2272_s23, 0 }
  0x2c   : > { %1435 = dma.vmem_to_smem (!%p1620_p5), %s1624_s29, 16, %s1558_s11, [#allocation6]  }
  0x2d   : > { %217 = sbr.rel (%p2274_p0) target bundleno = 559 (0x22f), region = 40  ;;  %p2275_p1 = scmp.eq.s32.totalorder (!%p2274_p0), %s1598_s19, 0 }
  0x32   : > { %1545 = dma.done.wait (%p2275_p1), [#allocation4], 16   ;;  %p2276_p7 = pmov %p2275_p1 }
  0x33   : > { %p2277_p4 = pmov %p2275_p1 }
  0x34   : > { %1547 = vsyncadd (%p2276_p7), [#allocation4], 4294967280 }
  0x35   : > { %1549 = dma.done.wait (%p2277_p4), [#allocation6], 32   ;;  %p2278_p6 = pmov %p2275_p1 }
  0x37   : > { %1551 = vsyncadd (%p2278_p6), [#allocation6], 4294967264 }
  0x38   : > { %231 = sfence }
  0x39   : > { %v287_v0 = vld [vmem:[%s2265_s1 + $0x78] sm:$0xff]  ;;  %v286_v1 = vld [vmem:[%s2265_s1 + $0x70] sm:$0xff]  ;;  %v285_v2 = vld [vmem:[%s2265_s1 + $0x68] sm:$0xff]  ;;  %p254_p5 = scmp.lt.s32.totalorder %s1598_s19, 1  ;;  %s288_s27 = sld [smem:[#allocation7]]  ;;  %v1559_v24 = vmov 0.0   ;;  %v403_v53 = vlaneseq }
  0x3a   : > { %1338 = vmatprep.subr.mxu0 %v287_v0  ;;  %1382 = vmatprep.subr.mxu1 %v287_v0  ;;  %v284_v3 = vld [vmem:[%s2265_s1 + $0x60] sm:$0xff]  ;;  %v283_v4 = vld [vmem:[%s2265_s1 + $0x58] sm:$0xff]  ;;  %v282_v5 = vld [vmem:[%s2265_s1 + $0x50] sm:$0xff]  ;;  %525 = vst [vmem:[#allocation2 + $0x30] sm:$0xff] %v1559_v24  ;;  %s1290_s28 = sld [smem:[#allocation3 + $0x1]]  ;;  %s1560_s29 = smov 16  }
  0x3b   : > { %1339 = vmatpush3.msra.mxu0 %v287_v0  ;;  %1398 = vmatpush3.msra.mxu1 %v287_v0  ;;  %v281_v6 = vld [vmem:[%s2265_s1 + $0x48] sm:$0xff]  ;;  %v280_v7 = vld [vmem:[%s2265_s1 + $0x40] sm:$0xff]  ;;  %v279_v8 = vld [vmem:[%s2265_s1 + $0x38] sm:$0xff]  ;;  %s2283_s19 = smov (!%p254_p5, %s1598_s19), 1  ;;  %527 = vst [vmem:[#allocation2 + $0x40] sm:$0xff] %v1559_v24  ;;  %s1561_s30 = smov 112  }
  0x3c   : > { %1340 = vmatprep.subr.mxu0 %v286_v1  ;;  %1383 = vmatprep.subr.mxu1 %v286_v1  ;;  %v278_v9 = vld [vmem:[%s2265_s1 + $0x30] sm:$0xff]  ;;  %v277_v10 = vld [vmem:[%s2265_s1 + $0x28] sm:$0xff]  ;;  %v276_v11 = vld [vmem:[%s2265_s1 + $0x20] sm:$0xff]  ;;  %s1312_s17 = sshll.u32 %s2283_s19, 6  ;;  %519 = vst [vmem:[#allocation2] sm:$0xff] %v1559_v24  ;;  %s455_s6 = sld [smem:[#allocation3]] }
  0x3d   : > { %1341 = vmatpush3.msra.mxu0 %v286_v1  ;;  %1399 = vmatpush3.msra.mxu1 %v286_v1  ;;  %v275_v12 = vld [vmem:[%s2265_s1 + $0x18] sm:$0xff]  ;;  %v274_v13 = vld [vmem:[%s2265_s1 + $0x10] sm:$0xff]  ;;  %v273_v14 = vld [vmem:[%s2265_s1 + $0x8] sm:$0xff]  ;;  %s1713_s24 = scalar_lea.vmem %s2264_s0, %s1312_s17  ;;  %520 = vst [vmem:[#allocation2 + $0x8] sm:$0xff] %v1559_v24  ;;  %v1765_v54 = vand.u32 127, %v403_v53  ;;  %s1291_s7 = sld [smem:[#allocation3 + $0x2]] }
  0x3e   : > { %1342 = vmatprep.subr.mxu0 %v285_v2  ;;  %1384 = vmatprep.subr.mxu1 %v285_v2  ;;  %v272_v15 = vld [vmem:[%s2265_s1] sm:$0xff]  ;;  %v265_v18 = vld [vmem:[%s1713_s24 + $0x8] sm:$0xff]  ;;  %v266_v20 = vld [vmem:[%s1713_s24 + $0x10] sm:$0xff]  ;;  %521 = vst [vmem:[#allocation2 + $0x10] sm:$0xff] %v1559_v24  ;;  %s1292_s8 = sld [smem:[#allocation7 + $0x1]]  ;;  %vm618_vm2 = vcmask 1046528   ;;  %s2157_s25 = scalar_lea.vmem %s2269_s5, %s1312_s17 }
  0x3f   : > { %1343 = vmatpush3.msra.mxu0 %v285_v2  ;;  %1400 = vmatpush3.msra.mxu1 %v285_v2  ;;  %v1719_v16 = vld [vmem:[%s1713_s24] sm:$0xff]  ;;  %v269_v19 = vld [vmem:[%s1713_s24 + $0x28] sm:$0xff]  ;;  %v270_v21 = vld [vmem:[%s1713_s24 + $0x30] sm:$0xff]  ;;  %522 = vst [vmem:[#allocation2 + $0x18] sm:$0xff] %v1559_v24  ;;  %v289_v25 = vstv %s288_s27  ;;  %vm405_vm0 = vcmp.ge.s32.totalorder %v1765_v54, 16  ;;  %s1293_s9 = sld [smem:[#allocation5 + $0x1]] }
  0x40   : > { %1344 = vmatprep.subr.mxu0 %v284_v3  ;;  %1385 = vmatprep.subr.mxu1 %v284_v3  ;;  %v268_v17 = vld [vmem:[%s1713_s24 + $0x20] sm:$0xff]  ;;  %v267_v22 = vld [vmem:[%s1713_s24 + $0x18] sm:$0xff]  ;;  %524 = vst [vmem:[#allocation2 + $0x28] sm:$0xff] %v1559_v24  ;;  %528 = vst [vmem:[#allocation2 + $0x48] sm:$0xff] %v1559_v24  ;;  %v1738_v45 = vstv %s1290_s28  ;;  %vm430_vm1 = vcmp.lt.s32.totalorder %v1765_v54, 112  ;;  %s1294_s10 = sld [smem:[#allocation5 + $0x2]] }
  0x41   : > { %1345 = vmatpush3.msra.mxu0 %v284_v3  ;;  %1401 = vmatpush3.msra.mxu1 %v284_v3  ;;  %v271_v23 = vld [vmem:[%s1713_s24 + $0x38] sm:$0xff]  ;;  %530 = vst [vmem:[#allocation2 + $0x58] sm:$0xff] %v1559_v24  ;;  %531 = vst [vmem:[#allocation2 + $0x60] sm:$0xff] %v1559_v24  ;;  %s1791_s11 = sld [smem:[#allocation5]]  ;;  %vm693_vm3 = vcmask 1045504  }
  0x42   : > { %1346 = vmatprep.subr.mxu0 %v283_v4  ;;  %1386 = vmatprep.subr.mxu1 %v283_v4  ;;  %533 = vst [vmem:[#allocation2 + $0x70] sm:$0xff] %v1559_v24  ;;  %534 = vst [vmem:[#allocation2 + $0x78] sm:$0xff] %v1559_v24  ;;  %v1768_v55 = vstv %s455_s6  ;;  %s1797_s12 = sld [smem:[#allocation5 + $0x7]] }
  0x43   : > { %1347 = vmatpush3.msra.mxu0 %v283_v4  ;;  %1402 = vmatpush3.msra.mxu1 %v283_v4  ;;  %536 = vst [vmem:[#allocation2 + $0x88] sm:$0xff] %v1559_v24  ;;  %537 = vst [vmem:[#allocation2 + $0x90] sm:$0xff] %v1559_v24  ;;  %v1776_v61 = vstv %s1291_s7  ;;  %s1804_s13 = sld [smem:[#allocation5 + $0x3]] }
  0x44   : > { %1348 = vmatprep.subr.mxu0 %v282_v5  ;;  %1387 = vmatprep.subr.mxu1 %v282_v5  ;;  %539 = vst [vmem:[#allocation2 + $0xa0] sm:$0xff] %v1559_v24  ;;  %540 = vst [vmem:[#allocation2 + $0xa8] sm:$0xff] %v1559_v24  ;;  %s1810_s14 = sld [smem:[#allocation5 + $0x4]] }
  0x45   : > { %1349 = vmatpush3.msra.mxu0 %v282_v5  ;;  %1403 = vmatpush3.msra.mxu1 %v282_v5  ;;  %542 = vst [vmem:[#allocation2 + $0xb8] sm:$0xff] %v1559_v24  ;;  %543 = vst [vmem:[#allocation2 + $0xc0] sm:$0xff] %v1559_v24  ;;  %v1783_v5 = vstv %s1292_s8  ;;  %s1816_s15 = sld [smem:[#allocation5 + $0x5]] }
  0x46   : > { %1350 = vmatprep.subr.mxu0 %v281_v6  ;;  %1388 = vmatprep.subr.mxu1 %v281_v6  ;;  %545 = vst [vmem:[#allocation2 + $0xd0] sm:$0xff] %v1559_v24  ;;  %546 = vst [vmem:[#allocation2 + $0xd8] sm:$0xff] %v1559_v24  ;;  %s1820_s16 = sld [smem:[#allocation5 + $0x8]] }
  0x47   : > { %1351 = vmatpush3.msra.mxu0 %v281_v6  ;;  %1404 = vmatpush3.msra.mxu1 %v281_v6  ;;  %547 = vst [vmem:[#allocation2 + $0xe0] sm:$0xff] %v1559_v24  ;;  %548 = vst [vmem:[#allocation2 + $0xe8] sm:$0xff] %v1559_v24  ;;  %s1824_s20 = sld [smem:[#allocation5 + $0x6]] }
  0x48   : > { %1352 = vmatprep.subr.mxu0 %v280_v7  ;;  %1389 = vmatprep.subr.mxu1 %v280_v7  ;;  %s1848_s21 = sld [smem:[#allocation7 + $0x2]] }
  0x49   : > { %1353 = vmatpush3.msra.mxu0 %v280_v7  ;;  %1405 = vmatpush3.msra.mxu1 %v280_v7 }
  0x4a   : > { %1354 = vmatprep.subr.mxu0 %v279_v8  ;;  %1390 = vmatprep.subr.mxu1 %v279_v8 }
  0x4b   : > { %1355 = vmatpush3.msra.mxu0 %v279_v8  ;;  %1406 = vmatpush3.msra.mxu1 %v279_v8 }
  0x4c   : > { %1356 = vmatprep.subr.mxu0 %v278_v9  ;;  %1391 = vmatprep.subr.mxu1 %v278_v9 }
  0x4d   : > { %1357 = vmatpush3.msra.mxu0 %v278_v9  ;;  %1407 = vmatpush3.msra.mxu1 %v278_v9 }
  0x4e   : > { %1358 = vmatprep.subr.mxu0 %v277_v10  ;;  %1392 = vmatprep.subr.mxu1 %v277_v10 }
  0x4f   : > { %1359 = vmatpush3.msra.mxu0 %v277_v10  ;;  %1408 = vmatpush3.msra.mxu1 %v277_v10 }
  0x50   : > { %1360 = vmatprep.subr.mxu0 %v276_v11  ;;  %1393 = vmatprep.subr.mxu1 %v276_v11 }
  0x51   : > { %1361 = vmatpush3.msra.mxu0 %v276_v11  ;;  %1409 = vmatpush3.msra.mxu1 %v276_v11  ;;  %v558_v11 = vld [vmem:[#allocation2 + $0x7] sm:$0xff] }
  0x52   : > { %1362 = vmatprep.subr.mxu0 %v275_v12  ;;  %1394 = vmatprep.subr.mxu1 %v275_v12 }
  0x53   : > { %1363 = vmatpush3.msra.mxu0 %v275_v12  ;;  %1410 = vmatpush3.msra.mxu1 %v275_v12  ;;  %v559_v12 = vld [vmem:[#allocation2 + $0xf] sm:$0x3] }
  0x54   : > { %1364 = vmatprep.subr.mxu0 %v274_v13  ;;  %1395 = vmatprep.subr.mxu1 %v274_v13 }
  0x55   : > { %1365 = vmatpush3.msra.mxu0 %v274_v13  ;;  %1411 = vmatpush3.msra.mxu1 %v274_v13  ;;  %v1793_v13 = vstv %s1293_s9 }
  0x56   : > { %1366 = vmatprep.subr.mxu0 %v273_v14  ;;  %1396 = vmatprep.subr.mxu1 %v273_v14 }
  0x57   : > { %1367 = vmatpush3.msra.mxu0 %v273_v14  ;;  %1412 = vmatpush3.msra.mxu1 %v273_v14 }
  0x58   : > { %1368 = vmatprep.subr.mxu0 %v272_v15  ;;  %1397 = vmatprep.subr.mxu1 %v272_v15 }
  0x59   : > { %1369 = vmatpush3.msra.mxu0 %v272_v15  ;;  %1413 = vmatpush3.msra.mxu1 %v272_v15 }
  0x5a   : > { %1370 = vmatprep.mubr.f32.mxu0 %v1719_v16  ;;  %1376 = vmatprep.mubr.f32.mxu1 %v268_v17 }
  0x5b   : > { %1371 = vmatmul.mubr.f32.vlgmr.msra.gmra.mxu0 %v265_v18  ;;  %1377 = vmatmul.mubr.f32.vlgmr.msra.gmra.mxu1 %v269_v19 }
  0x5c   : > { %1373 = vmatprep.mubr.f32.mxu0 %v266_v20  ;;  %1379 = vmatprep.mubr.f32.mxu1 %v270_v21  ;;  %v586_v20 = vmul.f32 %v1793_v13, %v558_v11  ;;  %v587_v21 = vmul.f32 %v1793_v13, %v559_v12 }
  0x5f   : > { %1374 = vmatmul.mubr.f32.gmra.mxu0 %v267_v22  ;;  %1380 = vmatmul.mubr.f32.gmra.mxu1 %v271_v23 }
 0x11b   : > { %v1372_v26 = vpop.f32.mrf.mxu0  ;;  %v1378_v27 = vpop.f32.mrf.mxu1 }
 0x11c   : > { %v362_v28 = vadd.f32 %v1372_v26, %v289_v25  ;;  %v382_v29 = vadd.f32 %v1378_v27, %v289_v25 }
 0x11d   : > { %v356_v30 = vpop.f32.mrf.mxu0  ;;  %v376_v31 = vpop.f32.mrf.mxu1 }
 0x11e   : > { %v396_v32 = vmax.f32 %v362_v28, 0.0  ;;  %v1729_v33 = vmax.f32 %v382_v29, 0.0  ;;  %v357_v34 = vadd.f32 %v356_v30, %v289_v25  ;;  %v377_v39 = vadd.f32 %v376_v31, %v289_v25 }
 0x11f   : > { %v1381_v35 = vpop.f32.mrf.mxu1  ;;  %v1375_v42 = vpop.f32.mrf.mxu0  ;;  %v1814_v28 = vstv %s1294_s10 }
 0x120   : > { %416 = vrot.lane.b32.xlu1 %v1729_v33, %s1560_s29  ;;  %408 = vrot.lane.b32.xlu0 %v396_v32, %s1560_s29  ;;  %v392_v36 = vadd.f32 %v1381_v35, %v289_v25  ;;  %v1734_v38 = vmax.f32 %v357_v34, 0.0  ;;  %v372_v43 = vadd.f32 %v1375_v42, %v289_v25  ;;  %v1743_v47 = vmax.f32 %v377_v39, 0.0 }
 0x121   : > { %v386_v37 = vpop.f32.mrf.mxu1  ;;  %v366_v50 = vpop.f32.mrf.mxu0  ;;  %v468_v62 = vmul.f32 %v1738_v45, %v396_v32  ;;  %v472_v7 = vmul.f32 %v1738_v45, %v1729_v33  ;;  %v661_v34 = vmul.f32 %v1814_v28, %v558_v11  ;;  %v662_v35 = vmul.f32 %v1814_v28, %v559_v12 }
 0x122   : > { %v402_v40 = vmax.f32 %v392_v36, 0.0  ;;  %v387_v41 = vadd.f32 %v386_v37, %v289_v25  ;;  %v1748_v49 = vmax.f32 %v372_v43, 0.0  ;;  %v367_v51 = vadd.f32 %v366_v50, %v289_v25 }
 0x123   : > { %v467_v23 = vmul.f32 %v1738_v45, %v1734_v38  ;;  %v1829_v42 = vstv %s1791_s11  ;;  %v1832_v43 = vstv %s1797_s12  ;;  %v1862_v12 = vstv %s1824_s20 }
 0x124   : > { %433 = vrot.lane.b32.xlu1 %v396_v32, %s1561_s30  ;;  %406 = vrot.lane.b32.xlu0 %v1734_v38, %s1560_s29  ;;  %v401_v44 = vmax.f32 %v387_v41, 0.0  ;;  %v1741_v46 = vmul.f32 %v1738_v45, %v402_v40  ;;  %v1760_v52 = vmax.f32 %v367_v51, 0.0  ;;  %v619_v32 = vrot.slane %v586_v20, 1  ;;  %v940_v41 = vld [vmem:[#allocation2 + $0xe7] sm:$0x3] }
 0x125   : > { %v576_v51 = vmul.f32 %v1829_v42, %v558_v11 }
 0x126   : > { %v1746_v48 = vmul.f32 %v1738_v45, %v401_v44 }
 0x128   : > { %441 = vrot.lane.b32.xlu1 %v1729_v33, %s1561_s30  ;;  %414 = vrot.lane.b32.xlu0 %v1743_v47, %s1560_s29  ;;  %v620_v33 = vrot.slane %v587_v21, 1  ;;  %v471_v21 = vmul.f32 %v1738_v45, %v1743_v47 }
 0x12a   : > { %v621_v53 = vsel %vm618_vm2, %v619_v32, %v620_v33 }
 0x12c   : > { %412 = vrot.lane.b32.xlu1 %v1748_v49, %s1560_s29  ;;  %431 = vrot.lane.b32.xlu0 %v1734_v38, %s1561_s30 }
 0x130   : > { %420 = vrot.lane.b32.xlu1 %v402_v40, %s1560_s29  ;;  %439 = vrot.lane.b32.xlu0 %v1743_v47, %s1561_s30 }
 0x134   : > { %437 = vrot.lane.b32.xlu1 %v1748_v49, %s1561_s30  ;;  %418 = vrot.lane.b32.xlu0 %v401_v44, %s1560_s29 }
 0x138   : > { %410 = vrot.lane.b32.xlu1 %v1760_v52, %s1560_s29  ;;  %435 = vrot.lane.b32.xlu0 %v1760_v52, %s1561_s30 }
 0x13c   : > { %445 = vrot.lane.b32.xlu1 %v402_v40, %s1561_s30  ;;  %443 = vrot.lane.b32.xlu0 %v401_v44, %s1561_s30  ;;  %v939_v40 = vld [vmem:[#allocation2 + $0xdf] sm:$0xff] }
 0x192   : > { %v417_v56 = vpop.permute.xlu1 %416  ;;  %v409_v57 = vpop.permute.xlu0 %408 }
 0x193   : > { %v423_v58 = vsel %vm405_vm0, %v409_v57, 0.0  ;;  %v427_v60 = vsel %vm405_vm0, %v417_v56, 0.0  ;;  %v694_v56 = vrot.slane %v661_v34, 2  ;;  %v695_v57 = vrot.slane %v662_v35, 2 }
 0x194   : > { %v458_v59 = vmul.f32 %v1768_v55, %v423_v58  ;;  %v462_v2 = vmul.f32 %v1768_v55, %v427_v60  ;;  %v967_v60 = vmul.f32 %v1832_v43, %v939_v40 }
 0x196   : > { %v434_v63 = vpop.permute.xlu1 %433  ;;  %v407_v0 = vpop.permute.xlu0 %406  ;;  %v476_v3 = vadd.f32 %v468_v62, %v458_v59  ;;  %v480_v15 = vadd.f32 %v472_v7, %v462_v2  ;;  %v968_v62 = vmul.f32 %v1832_v43, %v940_v41  ;;  %v1851_v2 = vstv %s1810_s14 }
 0x197   : > { %v448_v1 = vsel %vm430_vm1, %v434_v63, 0.0  ;;  %v422_v6 = vsel %vm405_vm0, %v407_v0, 0.0  ;;  %v1844_v63 = vstv %s1804_s13  ;;  %v696_v7 = vsel %vm693_vm3, %v694_v56, %v695_v57 }
 0x198   : > { %v486_v4 = vmul.f32 %v1776_v61, %v448_v1  ;;  %v457_v18 = vmul.f32 %v1768_v55, %v422_v6  ;;  %v651_v6 = vadd.f32 %v621_v53, %v576_v51 }
 0x19a   : > { %v494_v8 = vadd.f32 %v486_v4, %v476_v3  ;;  %v442_v9 = vpop.permute.xlu1 %441  ;;  %v1789_v10 = vpop.permute.xlu0 %414  ;;  %v475_v29 = vadd.f32 %v467_v23, %v457_v18  ;;  %v1854_v3 = vstv %s1816_s15  ;;  %v470_v23 = vmul.f32 %v1738_v45, %v1748_v49 }
 0x19b   : > { %v452_v14 = vsel %vm430_vm1, %v442_v9, 0.0  ;;  %v1007_v9 = vrot.slane %v968_v62, 1 }
 0x19c   : > { %v504_v17 = vadd.f32 %v1783_v5, %v494_v8  ;;  %v490_v19 = vmul.f32 %v1776_v61, %v452_v14  ;;  %v1006_v8 = vrot.slane %v967_v60, 1 }
 0x19e   : > { %v512_v22 = vmax.f32 %v504_v17, 0.0  ;;  %v498_v24 = vadd.f32 %v490_v19, %v480_v15  ;;  %v1808_v25 = vpop.permute.xlu1 %412  ;;  %v432_v26 = vpop.permute.xlu0 %431 }
 0x19f   : > { %v447_v27 = vsel %vm430_vm1, %v432_v26, 0.0  ;;  %v1882_v26 = vmul.f32 %v1738_v45, %v1760_v52  ;;  %v425_v45 = vsel %vm405_vm0, %v1808_v25, 0.0  ;;  %v1894_v52 = vstv %s1848_s21 }
 0x1a0   : > { %551 = vst [vmem:[#allocation2 + $0x38] sm:$0xff] %v512_v22  ;;  %v508_v30 = vadd.f32 %v1783_v5, %v498_v24  ;;  %v485_v31 = vmul.f32 %v1776_v61, %v447_v27  ;;  %v426_v22 = vsel %vm405_vm0, %v1789_v10, 0.0  ;;  %v1878_v24 = vadd.f32 %v696_v7, %v651_v6 }
 0x1a1   : > { %v950_v27 = vmul.f32 %v1862_v12, %v939_v40  ;;  %v1008_v10 = vsel %vm618_vm2, %v1006_v8, %v1007_v9  ;;  %v461_v33 = vmul.f32 %v1768_v55, %v426_v22  ;;  %v460_v56 = vmul.f32 %v1768_v55, %v425_v45 }
 0x1a2   : > { %v516_v36 = vmax.f32 %v508_v30, 0.0  ;;  %v493_v37 = vadd.f32 %v485_v31, %v475_v29  ;;  %v421_v38 = vpop.permute.xlu1 %420  ;;  %v440_v30 = vpop.permute.xlu0 %439 }
 0x1a3   : > { %v429_v39 = vsel %vm405_vm0, %v421_v38, 0.0  ;;  %v479_v53 = vadd.f32 %v471_v21, %v461_v33 }
 0x1a4   : > { %555 = vst [vmem:[#allocation2 + $0x98] sm:$0xff] %v516_v36  ;;  %v503_v44 = vadd.f32 %v1783_v5, %v493_v37  ;;  %v464_v50 = vmul.f32 %v1768_v55, %v429_v39  ;;  %v451_v39 = vsel %vm430_vm1, %v440_v30, 0.0 }
 0x1a6   : > { %v511_v58 = vmax.f32 %v503_v44, 0.0  ;;  %v1839_v59 = vadd.f32 %v1741_v46, %v464_v50  ;;  %v1857_v46 = vstv %s1820_s16 }
 0x1a7   : > { %v1846_v0 = vld [vmem:[#allocation2 + $0x37] sm:$0xff]  ;;  %v563_v1 = vld [vmem:[#allocation2 + $0x3f] sm:$0x3]  ;;  %v1041_v11 = vmul.f32 %v1857_v46, %v939_v40  ;;  %v1042_v18 = vmul.f32 %v1857_v46, %v940_v41  ;;  %v1901_v40 = vadd.f32 %v1008_v10, %v950_v27  ;;  %v478_v27 = vadd.f32 %v470_v23, %v460_v56 }
 0x1a8   : > { %550 = vst [vmem:[#allocation2 + $0x20] sm:$0xff] %v511_v58  ;;  %v745_v4 = vld [vmem:[#allocation2 + $0x3f] sm:$0x3]  ;;  %v590_v14 = vmul.f32 %v1793_v13, %v1846_v0  ;;  %v591_v15 = vmul.f32 %v1793_v13, %v563_v1  ;;  %v772_v19 = vmul.f32 %v1851_v2, %v1846_v0  ;;  %v953_v29 = vmul.f32 %v1832_v43, %v1846_v0 }
 0x1a9   : > { %v926_v17 = vld [vmem:[#allocation2 + $0x3f] sm:$0x3]  ;;  %v773_v20 = vmul.f32 %v1851_v2, %v745_v4  ;;  %v1080_v31 = vrot.slane %v1041_v11, 2  ;;  %v1081_v34 = vrot.slane %v1042_v18, 2  ;;  %v665_v37 = vmul.f32 %v1814_v28, %v1846_v0 }
 0x1aa   : > { %v954_v47 = vmul.f32 %v1832_v43, %v926_v17  ;;  %v625_v32 = vrot.slane %v590_v14, 1  ;;  %v626_v49 = vrot.slane %v591_v15, 1  ;;  %v805_v35 = vrot.slane %v772_v19, 1  ;;  %v438_v14 = vpop.permute.xlu1 %437 }
 0x1ab   : > { %v806_v36 = vrot.slane %v773_v20, 1  ;;  %v666_v38 = vmul.f32 %v1814_v28, %v563_v1  ;;  %v846_v41 = vmul.f32 %v1854_v3, %v1846_v0  ;;  %v847_v44 = vmul.f32 %v1854_v3, %v745_v4  ;;  %v1917_v4 = vld [vmem:[#allocation2 + $0x97] sm:$0xff]  ;;  %v571_v9 = vld [vmem:[#allocation2 + $0x9f] sm:$0x3] }
 0x1ac   : > { %v985_v50 = vrot.slane %v953_v29, 1  ;;  %v986_v51 = vrot.slane %v954_v47, 1  ;;  %v627_v25 = vsel %vm618_vm2, %v625_v32, %v626_v49  ;;  %v1909_v57 = vsel %vm693_vm3, %v1080_v31, %v1081_v34  ;;  %v419_v29 = vpop.permute.xlu0 %418  ;;  %v1936_v32 = vld [vmem:[#allocation2 + $0x9f] sm:$0x3] }
 0x1ad   : > { %v578_v58 = vmul.f32 %v1829_v42, %v1846_v0  ;;  %v807_v60 = vsel %vm618_vm2, %v805_v35, %v806_v36  ;;  %v1027_v62 = vmul.f32 %v1857_v46, %v1846_v0  ;;  %v1028_v1 = vmul.f32 %v1857_v46, %v926_v17  ;;  %v1945_v36 = vld [vmem:[#allocation2 + $0x9f] sm:$0x3] }
 0x1ae   : > { %v700_v6 = vrot.slane %v665_v37, 2  ;;  %v701_v7 = vrot.slane %v666_v38, 2  ;;  %v761_v8 = vmul.f32 %v1844_v63, %v1846_v0  ;;  %v489_v11 = vmul.f32 %v1776_v61, %v451_v39 }
 0x1af   : > { %v653_v15 = vadd.f32 %v627_v25, %v578_v58  ;;  %v879_v18 = vrot.slane %v846_v41, 2  ;;  %v880_v19 = vrot.slane %v847_v44, 2  ;;  %v987_v20 = vsel %vm618_vm2, %v985_v50, %v986_v51  ;;  %v1949_v37 = vld [vmem:[#allocation2 + $0x1f] sm:$0xff]  ;;  %v743_v51 = vld [vmem:[#allocation2 + $0x27] sm:$0x3]  ;;  %v411_v25 = vpop.permute.xlu1 %410 }
 0x1b0   : > { %v835_v21 = vadd.f32 %v807_v60, %v761_v8  ;;  %v943_v17 = vmul.f32 %v1862_v12, %v1846_v0  ;;  %v1927_v22 = vmul.f32 %v1793_v13, %v1917_v4  ;;  %v1059_v47 = vrot.slane %v1027_v62, 2  ;;  %v436_v8 = vpop.permute.xlu0 %435 }
 0x1b1   : > { %v1060_v30 = vrot.slane %v1028_v1, 2  ;;  %v1930_v10 = vmul.f32 %v1793_v13, %v571_v9  ;;  %v1934_v31 = vmul.f32 %v1814_v28, %v1917_v4  ;;  %v702_v49 = vsel %vm693_vm3, %v700_v6, %v701_v7 }
 0x1b2   : > { %v1017_v0 = vadd.f32 %v987_v20, %v943_v17  ;;  %v1940_v33 = vmul.f32 %v1814_v28, %v571_v9  ;;  %v497_v34 = vadd.f32 %v489_v11, %v479_v53  ;;  %v1942_v23 = vadd.f32 %v702_v49, %v653_v15  ;;  %v561_v17 = vld [vmem:[#allocation2 + $0x27] sm:$0x3] }
 0x1b3   : > { %v881_v35 = vsel %vm693_vm3, %v879_v18, %v880_v19  ;;  %v961_v45 = vmul.f32 %v1832_v43, %v1917_v4  ;;  %v450_v38 = vsel %vm430_vm1, %v438_v14, 0.0  ;;  %v1957_v41 = vmul.f32 %v1829_v42, %v1917_v4 }
 0x1b4   : > { %v1953_v39 = vadd.f32 %v881_v35, %v835_v21  ;;  %v962_v50 = vmul.f32 %v1832_v43, %v1936_v32  ;;  %v1061_v53 = vsel %vm693_vm3, %v1059_v47, %v1060_v30  ;;  %v638_v56 = vrot.slane %v1930_v10, 1  ;;  %v444_v44 = vpop.permute.xlu0 %443 }
 0x1b5   : > { %v1967_v60 = vmul.f32 %v1851_v2, %v1917_v4  ;;  %v1091_v62 = vadd.f32 %v1061_v53, %v1017_v0  ;;  %v1972_v6 = vmul.f32 %v1851_v2, %v1945_v36  ;;  %v770_v7 = vmul.f32 %v1851_v2, %v1949_v37 }
 0x1b6   : > { %v997_v9 = vrot.slane %v961_v45, 1  ;;  %v1978_v11 = vmul.f32 %v1857_v46, %v1917_v4  ;;  %v771_v14 = vmul.f32 %v1851_v2, %v743_v51  ;;  %v844_v15 = vmul.f32 %v1854_v3, %v1949_v37 }
 0x1b7   : > { %v998_v18 = vrot.slane %v962_v50, 1  ;;  %v1985_v19 = vmul.f32 %v1793_v13, %v1949_v37  ;;  %v802_v20 = vrot.slane %v770_v7, 1  ;;  %v845_v21 = vmul.f32 %v1854_v3, %v743_v51  ;;  %v446_v7 = vpop.permute.xlu1 %445 }
 0x1b8   : > { %v803_v47 = vrot.slane %v771_v14, 1  ;;  %v876_v30 = vrot.slane %v844_v15, 2  ;;  %v507_v49 = vadd.f32 %v1783_v5, %v497_v34  ;;  %v488_v0 = vmul.f32 %v1776_v61, %v450_v38 }
 0x1b9   : > { %v760_v35 = vmul.f32 %v1844_v63, %v1949_v37  ;;  %v877_v45 = vrot.slane %v845_v21, 2  ;;  %v428_v50 = vsel %vm405_vm0, %v419_v29, 0.0  ;;  %v424_v53 = vsel %vm405_vm0, %v411_v25, 0.0 }
 0x1ba   : > { %v804_v51 = vsel %vm618_vm2, %v802_v20, %v803_v47  ;;  %v515_v58 = vmax.f32 %v507_v49, 0.0  ;;  %v496_v14 = vadd.f32 %v488_v0, %v478_v27  ;;  %v463_v15 = vmul.f32 %v1768_v55, %v428_v50 }
 0x1bb   : > { %v589_v34 = vmul.f32 %v1793_v13, %v561_v17  ;;  %v834_v38 = vadd.f32 %v804_v51, %v760_v35  ;;  %v878_v1 = vsel %vm693_vm3, %v876_v30, %v877_v45  ;;  %v459_v21 = vmul.f32 %v1768_v55, %v424_v53 }
 0x1bc   : > { %554 = vst [vmem:[#allocation2 + $0x80] sm:$0xff] %v515_v58  ;;  %v506_v29 = vadd.f32 %v1783_v5, %v496_v14  ;;  %v481_v25 = vadd.f32 %v1746_v48, %v463_v15  ;;  %v449_v20 = vsel %vm430_vm1, %v436_v8, 0.0  ;;  %v454_v27 = vsel %vm430_vm1, %v446_v7, 0.0 }
 0x1bd   : > { %v908_v47 = vadd.f32 %v878_v1, %v834_v38  ;;  %v477_v49 = vadd.f32 %v1882_v26, %v459_v21  ;;  %v487_v0 = vmul.f32 %v1776_v61, %v449_v20  ;;  %v492_v30 = vmul.f32 %v1776_v61, %v454_v27 }
 0x1be   : > { %v999_v55 = vsel %vm618_vm2, %v997_v9, %v998_v18  ;;  %v1036_v58 = vmul.f32 %v1857_v46, %v1936_v32  ;;  %v514_v35 = vmax.f32 %v506_v29, 0.0  ;;  %v453_v48 = vsel %vm430_vm1, %v444_v44, 0.0 }
 0x1bf   : > { %v916_v8 = vadd.f32 %v908_v47, %v1878_v24  ;;  %v495_v45 = vadd.f32 %v487_v0, %v477_v49  ;;  %v500_v1 = vadd.f32 %v492_v30, %v1839_v59  ;;  %v491_v26 = vmul.f32 %v1776_v61, %v453_v48 }
 0x1c0   : > { %v622_v50 = vrot.slane %v1985_v19, 1  ;;  %v623_v53 = vrot.slane %v589_v34, 1  ;;  %v663_v9 = vmul.f32 %v1814_v28, %v1949_v37  ;;  %v664_v18 = vmul.f32 %v1814_v28, %v561_v17  ;;  %553 = vst [vmem:[#allocation2 + $0x68] sm:$0xff] %v514_v35 }
 0x1c1   : > { %v1099_v32 = vadd.f32 %v1091_v62, %v916_v8  ;;  %v505_v54 = vadd.f32 %v1783_v5, %v495_v45  ;;  %v2024_v44 = vadd.f32 %v1783_v5, %v500_v1  ;;  %v499_v24 = vadd.f32 %v491_v26, %v481_v25 }
 0x1c2   : > { %v817_v59 = vrot.slane %v1967_v60, 1  ;;  %v947_v61 = vmul.f32 %v1862_v12, %v1917_v4  ;;  %v1071_v19 = vrot.slane %v1978_v11, 2  ;;  %v1072_v7 = vrot.slane %v1036_v58, 2 }
 0x1c3   : > { %v2279_v17 = vrot.slane %v1927_v22, 1  ;;  %v1109_v51 = vadd.f32 %v1894_v52, %v1099_v32  ;;  %v2036_v14 = vld [vmem:[#allocation2 + $0x7f] sm:$0xff]  ;;  %v751_v15 = vld [vmem:[#allocation2 + $0x87] sm:$0x3]  ;;  %v513_v34 = vmax.f32 %v505_v54, 0.0  ;;  %v2039_v38 = vadd.f32 %v1783_v5, %v499_v24 }
 0x1c4   : > { %v2043_v21 = vmul.f32 %v1854_v3, %v1917_v4  ;;  %v1021_v11 = vadd.f32 %v999_v55, %v947_v61  ;;  %v577_v10 = vmul.f32 %v1829_v42, %v1949_v37  ;;  %v624_v22 = vsel %vm618_vm2, %v622_v50, %v623_v53  ;;  %v932_v58 = vld [vmem:[#allocation2 + $0x87] sm:$0x3] }
 0x1c5   : > { %v639_v62 = vsel %vm618_vm2, %v2279_v17, %v638_v56  ;;  %v697_v56 = vrot.slane %v663_v9, 2  ;;  %v698_v29 = vrot.slane %v664_v18, 2  ;;  %v1117_v25 = vmax.f32 %v1109_v51, 0.0  ;;  %552 = vst [vmem:[#allocation2 + $0x50] sm:$0xff] %v513_v34  ;;  %v2072_v26 = vld [vmem:[#allocation2 + $0x87] sm:$0x3] }
 0x1c6   : > { %v778_v20 = vmul.f32 %v1851_v2, %v2036_v14  ;;  %v2051_v5 = vadd.f32 %v639_v62, %v1957_v41  ;;  %v2055_v27 = vmul.f32 %v1854_v3, %v1945_v36  ;;  %v1073_v47 = vsel %vm693_vm3, %v1071_v19, %v1072_v7 }
 0x1c7   : > { %v779_v37 = vmul.f32 %v1851_v2, %v751_v15  ;;  %v652_v49 = vadd.f32 %v624_v22, %v577_v10  ;;  %v1302_v0 = vmul.f32 -1.442695, %v1117_v25  ;;  %v852_v55 = vmul.f32 %v1854_v3, %v2036_v14  ;;  %v566_v19 = vld [vmem:[#allocation2 + $0x67] sm:$0xff]  ;;  %v567_v7 = vld [vmem:[#allocation2 + $0x6f] sm:$0x3] }
 0x1c8   : > { %v814_v30 = vrot.slane %v778_v20, 1  ;;  %v2280_v35 = vrot.slane %v1940_v33, 2  ;;  %v2281_v41 = vrot.slane %v1934_v31, 2  ;;  %v2068_v36 = vadd.f32 %v1073_v47, %v1021_v11  ;;  %v749_v47 = vld [vmem:[#allocation2 + $0x6f] sm:$0x3] }
 0x1c9   : > { %v815_v8 = vrot.slane %v779_v37, 1  ;;  %v853_v45 = vmul.f32 %v1854_v3, %v751_v15  ;;  %v699_v1 = vsel %vm693_vm3, %v697_v56, %v698_v29  ;;  %1456 = vpow2.f32 %v1302_v0 }
 0x1ca   : > { %v2066_v48 = vsel %vm693_vm3, %v2281_v41, %v2280_v35  ;;  %v764_v50 = vmul.f32 %v1844_v63, %v2036_v14  ;;  %v888_v53 = vrot.slane %v852_v55, 2  ;;  %v959_v9 = vmul.f32 %v1832_v43, %v2036_v14 }
 0x1cb   : > { %v816_v33 = vsel %vm618_vm2, %v814_v30, %v815_v8  ;;  %v889_v31 = vrot.slane %v853_v45, 2  ;;  %v960_v18 = vmul.f32 %v1832_v43, %v932_v58  ;;  %v2080_v32 = vadd.f32 %v699_v1, %v652_v49 }
 0x1cc   : > { %v838_v54 = vadd.f32 %v816_v33, %v764_v50  ;;  %v1033_v24 = vmul.f32 %v1857_v46, %v2036_v14  ;;  %v1034_v61 = vmul.f32 %v1857_v46, %v932_v58  ;;  %v2087_v17 = vmul.f32 %v1793_v13, %v2036_v14 }
 0x1cd   : > { %v2091_v62 = vmul.f32 %v1793_v13, %v2072_v26  ;;  %v994_v51 = vrot.slane %v959_v9, 1  ;;  %v995_v15 = vrot.slane %v960_v18, 1  ;;  %v890_v34 = vsel %vm693_vm3, %v888_v53, %v889_v31  ;;  %v930_v53 = vld [vmem:[#allocation2 + $0x6f] sm:$0x3] }
 0x1ce   : > { %v946_v11 = vmul.f32 %v1862_v12, %v2036_v14  ;;  %v1068_v10 = vrot.slane %v1033_v24, 2  ;;  %v1069_v22 = vrot.slane %v1034_v61, 2  ;;  %v594_v29 = vmul.f32 %v1793_v13, %v566_v19 }
 0x1cf   : > { %v996_v56 = vsel %vm618_vm2, %v994_v51, %v995_v15  ;;  %v595_v25 = vmul.f32 %v1793_v13, %v567_v7  ;;  %v669_v20 = vmul.f32 %v1814_v28, %v566_v19  ;;  %v912_v37 = vadd.f32 %v890_v34, %v838_v54 }
 0x1d0   : > { %v1020_v49 = vadd.f32 %v996_v56, %v946_v11  ;;  %v580_v0 = vmul.f32 %v1829_v42, %v566_v19  ;;  %v670_v30 = vmul.f32 %v1814_v28, %v567_v7  ;;  %v631_v55 = vrot.slane %v594_v29, 1 }
 0x1d1   : > { %v632_v58 = vrot.slane %v595_v25, 1  ;;  %v706_v35 = vrot.slane %v669_v20, 2  ;;  %v776_v41 = vmul.f32 %v1851_v2, %v566_v19  ;;  %v1070_v8 = vsel %vm693_vm3, %v1068_v10, %v1069_v22  ;;  %v564_v10 = vld [vmem:[#allocation2 + $0x4f] sm:$0xff]  ;;  %v565_v20 = vld [vmem:[#allocation2 + $0x57] sm:$0x3] }
 0x1d2   : > { %v707_v45 = vrot.slane %v670_v30, 2  ;;  %v777_v1 = vmul.f32 %v1851_v2, %v749_v47  ;;  %v850_v50 = vmul.f32 %v1854_v3, %v566_v19  ;;  %v763_v31 = vmul.f32 %v1844_v63, %v566_v19 }
 0x1d3   : > { %v633_v33 = vsel %vm618_vm2, %v631_v55, %v632_v58  ;;  %v811_v9 = vrot.slane %v776_v41, 1  ;;  %v851_v18 = vmul.f32 %v1854_v3, %v749_v47  ;;  %v957_v15 = vmul.f32 %v1832_v43, %v566_v19 }
 0x1d4   : > { %v655_v54 = vadd.f32 %v633_v33, %v580_v0  ;;  %v708_v24 = vsel %vm693_vm3, %v706_v35, %v707_v45  ;;  %v812_v61 = vrot.slane %v777_v1, 1  ;;  %v885_v7 = vrot.slane %v850_v50, 2 }
 0x1d5   : > { %v886_v51 = vrot.slane %v851_v18, 2  ;;  %v958_v34 = vmul.f32 %v1832_v43, %v930_v53  ;;  %v2113_v11 = vmul.f32 %v1857_v46, %v566_v19  ;;  %v1094_v22 = vadd.f32 %v1070_v8, %v1020_v49 }
 0x1d6   : > { %v730_v56 = vadd.f32 %v708_v24, %v655_v54  ;;  %v813_v29 = vsel %vm618_vm2, %v811_v9, %v812_v61  ;;  %v2117_v25 = vmul.f32 %v1857_v46, %v930_v53  ;;  %v1457_v47 = vpop.eup %1456  ;;  %v945_v30 = vmul.f32 %v1862_v12, %v566_v19  ;;  %v747_v9 = vld [vmem:[#allocation2 + $0x57] sm:$0x3] }
 0x1d7   : > { %v837_v0 = vadd.f32 %v813_v29, %v763_v31  ;;  %v991_v55 = vrot.slane %v957_v15, 1  ;;  %v992_v58 = vrot.slane %v958_v34, 1  ;;  %v1149_v35 = vadd.f32 1.0, %v1457_v47 }
 0x1d8   : > { %v887_v41 = vsel %vm693_vm3, %v885_v7, %v886_v51  ;;  %v920_v45 = vadd.f32 %v912_v37, %v730_v56  ;;  %v579_v1 = vmul.f32 %v1829_v42, %v564_v10  ;;  %v1065_v8 = vrot.slane %v2113_v11, 2 }
 0x1d9   : > { %v993_v49 = vsel %vm618_vm2, %v991_v55, %v992_v58  ;;  %v592_v50 = vmul.f32 %v1793_v13, %v564_v10  ;;  %v593_v53 = vmul.f32 %v1793_v13, %v565_v20  ;;  %1458 = vrcp.f32 %v1149_v35  ;;  %v928_v55 = vld [vmem:[#allocation2 + $0x57] sm:$0x3] }
 0x1da   : > { %v911_v33 = vadd.f32 %v887_v41, %v837_v0  ;;  %v1066_v19 = vrot.slane %v2117_v25, 2  ;;  %v1103_v31 = vadd.f32 %v2068_v36, %v920_v45  ;;  %v667_v37 = vmul.f32 %v1814_v28, %v564_v10 }
 0x1db   : > { %v628_v18 = vrot.slane %v592_v50, 1  ;;  %v629_v54 = vrot.slane %v593_v53, 1  ;;  %v668_v24 = vmul.f32 %v1814_v28, %v565_v20  ;;  %v1019_v61 = vadd.f32 %v993_v49, %v945_v30 }
 0x1dc   : > { %v1113_v7 = vadd.f32 %v1894_v52, %v1103_v31  ;;  %v762_v51 = vmul.f32 %v1844_v63, %v564_v10  ;;  %v774_v15 = vmul.f32 %v1851_v2, %v564_v10  ;;  %v703_v11 = vrot.slane %v667_v37, 2 }
 0x1dd   : > { %v630_v34 = vsel %vm618_vm2, %v628_v18, %v629_v54  ;;  %v704_v56 = vrot.slane %v668_v24, 2  ;;  %v775_v36 = vmul.f32 %v1851_v2, %v747_v9  ;;  %v848_v0 = vmul.f32 %v1854_v3, %v564_v10 }
 0x1de   : > { %v1121_v29 = vmax.f32 %v1113_v7, 0.0  ;;  %v654_v25 = vadd.f32 %v630_v34, %v579_v1  ;;  %v808_v47 = vrot.slane %v774_v15, 1  ;;  %v849_v58 = vmul.f32 %v1854_v3, %v747_v9 }
 0x1df   : > { %v705_v20 = vsel %vm693_vm3, %v703_v11, %v704_v56  ;;  %v809_v30 = vrot.slane %v775_v36, 1  ;;  %v944_v35 = vmul.f32 %v1862_v12, %v564_v10  ;;  %v882_v49 = vrot.slane %v848_v0, 2 }
 0x1e0   : > { %v1306_v41 = vmul.f32 -1.442695, %v1121_v29  ;;  %v729_v45 = vadd.f32 %v705_v20, %v654_v25  ;;  %v955_v50 = vmul.f32 %v1832_v43, %v564_v10  ;;  %v883_v31 = vrot.slane %v849_v58, 2 }
 0x1e1   : > { %v810_v53 = vsel %vm618_vm2, %v808_v47, %v809_v30  ;;  %v956_v1 = vmul.f32 %v1832_v43, %v928_v55  ;;  %v1029_v18 = vmul.f32 %v1857_v46, %v564_v10  ;;  %v1030_v15 = vmul.f32 %v1857_v46, %v928_v55 }
 0x1e2   : > { %1460 = vpow2.f32 %v1306_v41  ;;  %v836_v54 = vadd.f32 %v810_v53, %v762_v51  ;;  %v919_v37 = vadd.f32 %v911_v33, %v729_v45  ;;  %v988_v24 = vrot.slane %v955_v50, 1 }
 0x1e3   : > { %v884_v9 = vsel %vm693_vm3, %v882_v49, %v883_v31  ;;  %v989_v7 = vrot.slane %v956_v1, 1  ;;  %v1062_v34 = vrot.slane %v1029_v18, 2  ;;  %v518_v36 = vmax.f32 %v2024_v44, 0.0 }
 0x1e4   : > { %v910_v11 = vadd.f32 %v884_v9, %v836_v54  ;;  %v1102_v56 = vadd.f32 %v1094_v22, %v919_v37  ;;  %v517_v29 = vmax.f32 %v2039_v38, 0.0  ;;  %v818_v25 = vrot.slane %v1972_v6, 1 }
 0x1e5   : > { %v1067_v10 = vsel %vm693_vm3, %v1065_v8, %v1066_v19  ;;  %v990_v33 = vsel %vm618_vm2, %v988_v24, %v989_v7  ;;  %v1063_v51 = vrot.slane %v1030_v15, 2  ;;  %557 = vst [vmem:[#allocation2 + $0xc8] sm:$0xff] %v518_v36  ;;  %v917_v6 = vadd.f32 %v1953_v39, %v2080_v32 }
 0x1e6   : > { %v1093_v47 = vadd.f32 %v1067_v10, %v1019_v61  ;;  %v918_v0 = vadd.f32 %v910_v11, %v1942_v23  ;;  %v1018_v20 = vadd.f32 %v990_v33, %v944_v35  ;;  %v1112_v55 = vadd.f32 %v1894_v52, %v1102_v56  ;;  %556 = vst [vmem:[#allocation2 + $0xb0] sm:$0xff] %v517_v29  ;;  %v1459_v22 = vpop.eup %1458 }
 0x1e7   : > { %v634_v44 = vrot.slane %v2087_v17, 1  ;;  %v635_v23 = vrot.slane %v2091_v62, 1  ;;  %v1064_v38 = vsel %vm693_vm3, %v1062_v34, %v1063_v51  ;;  %v1173_v8 = vmul.f32 %v1459_v22, %v1719_v16 }
 0x1e8   : > { %v1092_v19 = vadd.f32 %v1064_v38, %v1018_v20  ;;  %v1101_v61 = vadd.f32 %v1093_v47, %v918_v0  ;;  %v1120_v30 = vmax.f32 %v1112_v55, 0.0  ;;  %v891_v58 = vrot.slane %v2043_v21, 2 }
 0x1e9   : > { %v892_v35 = vrot.slane %v2055_v27, 2  ;;  %v671_v41 = vmul.f32 %v1814_v28, %v2036_v14  ;;  %v672_v39 = vmul.f32 %v1814_v28, %v2072_v26  ;;  %v819_v32 = vsel %vm618_vm2, %v817_v59, %v818_v25  ;;  %1181 = vst [vmem:[%s2157_s25] sm:$0xff] %v1173_v8 }
 0x1ea   : > { %v1100_v17 = vadd.f32 %v1092_v19, %v917_v6  ;;  %v1111_v16 = vadd.f32 %v1894_v52, %v1101_v61  ;;  %v1305_v62 = vmul.f32 -1.442695, %v1120_v30  ;;  %v2178_v21 = vadd.f32 %v2066_v48, %v2051_v5 }
 0x1eb   : > { %v765_v27 = vmul.f32 %v1844_v63, %v1917_v4  ;;  %v636_v45 = vsel %vm618_vm2, %v634_v44, %v635_v23  ;;  %v2185_v26 = vadd.f32 %v1909_v57, %v1901_v40  ;;  %v581_v60 = vmul.f32 %v1829_v42, %v2036_v14 }
 0x1ec   : > { %v1110_v59 = vadd.f32 %v1894_v52, %v1100_v17  ;;  %v1119_v49 = vmax.f32 %v1111_v16, 0.0  ;;  %1462 = vpow2.f32 %v1305_v62  ;;  %v2193_v5 = vsel %vm693_vm3, %v891_v58, %v892_v35  ;;  %v756_v53 = vld [vmem:[#allocation2 + $0xc7] sm:$0xff]  ;;  %v757_v31 = vld [vmem:[#allocation2 + $0xcf] sm:$0x3] }
 0x1ed   : > { %v2190_v50 = vadd.f32 %v819_v32, %v765_v27  ;;  %v709_v48 = vrot.slane %v671_v41, 2  ;;  %v710_v4 = vrot.slane %v672_v39, 2  ;;  %v656_v1 = vadd.f32 %v636_v45, %v581_v60  ;;  %v938_v7 = vld [vmem:[#allocation2 + $0xcf] sm:$0x3]  ;;  %v573_v0 = vld [vmem:[#allocation2 + $0xb7] sm:$0x3] }
 0x1ee   : > { %v1118_v18 = vmax.f32 %v1110_v59, 0.0  ;;  %v1304_v40 = vmul.f32 -1.442695, %v1119_v49  ;;  %v784_v57 = vmul.f32 %v1851_v2, %v756_v53  ;;  %v767_v14 = vmul.f32 %v1844_v63, %v756_v53  ;;  %v572_v47 = vld [vmem:[#allocation2 + $0xaf] sm:$0xff]  ;;  %v755_v58 = vld [vmem:[#allocation2 + $0xb7] sm:$0x3] }
 0x1ef   : > { %v1461_v54 = vpop.eup %1460  ;;  %v785_v37 = vmul.f32 %v1851_v2, %v757_v31  ;;  %v858_v24 = vmul.f32 %v1854_v3, %v756_v53  ;;  %v859_v9 = vmul.f32 %v1854_v3, %v757_v31  ;;  %v965_v25 = vmul.f32 %v1832_v43, %v756_v53 }
 0x1f0   : > { %v1153_v15 = vadd.f32 1.0, %v1461_v54  ;;  %v1303_v34 = vmul.f32 -1.442695, %v1118_v18  ;;  %1464 = vpow2.f32 %v1304_v40  ;;  %v823_v11 = vrot.slane %v784_v57, 1 }
 0x1f1   : > { %v824_v56 = vrot.slane %v785_v37, 1  ;;  %v897_v36 = vrot.slane %v858_v24, 2  ;;  %v898_v29 = vrot.slane %v859_v9, 2  ;;  %v966_v10 = vmul.f32 %v1832_v43, %v938_v7 }
 0x1f2   : > { %1466 = vrcp.f32 %v1153_v15  ;;  %v2203_v33 = vmul.f32 %v1857_v46, %v756_v53  ;;  %v2206_v51 = vmul.f32 %v1857_v46, %v938_v7  ;;  %v711_v20 = vsel %vm693_vm3, %v709_v48, %v710_v4 }
 0x1f3   : > { %1468 = vpow2.f32 %v1303_v34  ;;  %v825_v55 = vsel %vm618_vm2, %v823_v11, %v824_v56  ;;  %v1003_v22 = vrot.slane %v965_v25, 1  ;;  %v2210_v6 = vadd.f32 %v711_v20, %v656_v1  ;;  %v1488_v20 = vld [vmem:[%s1713_s24 + $0x20] sm:$0xff] }
 0x1f4   : > { %v841_v44 = vadd.f32 %v825_v55, %v767_v14  ;;  %v949_v23 = vmul.f32 %v1862_v12, %v756_v53  ;;  %v1004_v38 = vrot.slane %v966_v10, 1  ;;  %v899_v8 = vsel %vm693_vm3, %v897_v36, %v898_v29 }
 0x1f5   : > { %v600_v19 = vmul.f32 %v1793_v13, %v572_v47  ;;  %v601_v61 = vmul.f32 %v1793_v13, %v573_v0  ;;  %v675_v30 = vmul.f32 %v1814_v28, %v572_v47  ;;  %v1077_v41 = vrot.slane %v2203_v33, 2 }
 0x1f6   : > { %v1005_v35 = vsel %vm618_vm2, %v1003_v22, %v1004_v38  ;;  %v1078_v39 = vrot.slane %v2206_v51, 2  ;;  %v676_v32 = vmul.f32 %v1814_v28, %v573_v0  ;;  %v583_v17 = vmul.f32 %v1829_v42, %v572_v47  ;;  %v936_v28 = vld [vmem:[#allocation2 + $0xb7] sm:$0x3] }
 0x1f7   : > { %v640_v16 = vrot.slane %v600_v19, 1  ;;  %v641_v62 = vrot.slane %v601_v61, 1  ;;  %v715_v27 = vrot.slane %v675_v30, 2  ;;  %v915_v45 = vadd.f32 %v899_v8, %v841_v44 }
 0x1f8   : > { %v716_v60 = vrot.slane %v676_v32, 2  ;;  %v782_v13 = vmul.f32 %v1851_v2, %v572_v47  ;;  %v783_v59 = vmul.f32 %v1851_v2, %v755_v58  ;;  %v1023_v48 = vadd.f32 %v1005_v35, %v949_v23 }
 0x1f9   : > { %v1463_v49 = vpop.eup %1462  ;;  %v642_v4 = vsel %vm618_vm2, %v640_v16, %v641_v62  ;;  %v856_v53 = vmul.f32 %v1854_v3, %v572_v47  ;;  %v857_v31 = vmul.f32 %v1854_v3, %v755_v58  ;;  %v766_v18 = vmul.f32 %v1844_v63, %v572_v47  ;;  %v1489_v16 = vld [vmem:[%s1713_s24 + $0x18] sm:$0xff] }
 0x1fa   : > { %v1152_v1 = vadd.f32 1.0, %v1463_v49  ;;  %v658_v42 = vadd.f32 %v642_v4, %v583_v17  ;;  %v820_v40 = vrot.slane %v782_v13, 1  ;;  %v717_v57 = vsel %vm693_vm3, %v715_v27, %v716_v60  ;;  %v1490_v13 = vld [vmem:[%s1713_s24 + $0x10] sm:$0xff] }
 0x1fb   : > { %v821_v54 = vrot.slane %v783_v59, 1  ;;  %v894_v14 = vrot.slane %v856_v53, 2  ;;  %v895_v37 = vrot.slane %v857_v31, 2  ;;  %v963_v24 = vmul.f32 %v1832_v43, %v572_v47 }
 0x1fc   : > { %1470 = vrcp.f32 %v1152_v1  ;;  %v733_v2 = vadd.f32 %v717_v57, %v658_v42  ;;  %v964_v9 = vmul.f32 %v1832_v43, %v936_v28  ;;  %v948_v15 = vmul.f32 %v1862_v12, %v572_v47 }
 0x1fd   : > { %v1465_v7 = vpop.eup %1464  ;;  %v822_v3 = vsel %vm618_vm2, %v820_v40, %v821_v54  ;;  %v1037_v63 = vmul.f32 %v1857_v46, %v572_v47  ;;  %v1038_v34 = vmul.f32 %v1857_v46, %v936_v28  ;;  %v1000_v29 = vrot.slane %v963_v24, 1  ;;  %v1492_v40 = vld [vmem:[%s1713_s24 + $0x38] sm:$0xff]  ;;  %v1494_v24 = vld [vmem:[%s1713_s24 + $0x28] sm:$0xff] }
 0x1fe   : > { %v1151_v11 = vadd.f32 1.0, %v1465_v7  ;;  %v840_v56 = vadd.f32 %v822_v3, %v766_v18  ;;  %v923_v36 = vadd.f32 %v915_v45, %v733_v2  ;;  %v896_v10 = vsel %vm693_vm3, %v894_v14, %v895_v37  ;;  %v1493_v14 = vld [vmem:[%s1713_s24 + $0x30] sm:$0xff] }
 0x1ff   : > { %v1467_v25 = vpop.eup %1466  ;;  %v1001_v33 = vrot.slane %v964_v9, 1  ;;  %v1074_v43 = vrot.slane %v1037_v63, 2  ;;  %v1075_v51 = vrot.slane %v1038_v34, 2  ;;  %v913_v46 = vadd.f32 %v2193_v5, %v2190_v50 }
 0x200   : > { %v1469_v0 = vpop.eup %1468  ;;  %v1177_v55 = vmul.f32 %v1488_v20, %v1467_v25  ;;  %1472 = vrcp.f32 %v1151_v11  ;;  %v914_v12 = vadd.f32 %v896_v10, %v840_v56  ;;  %v1106_v47 = vadd.f32 %v2185_v26, %v923_v36 }
 0x201   : > { %v1150_v22 = vadd.f32 1.0, %v1469_v0  ;;  %v1079_v44 = vsel %vm693_vm3, %v1077_v41, %v1078_v39  ;;  %v1002_v23 = vsel %vm618_vm2, %v1000_v29, %v1001_v33  ;;  %v1076_v30 = vsel %vm693_vm3, %v1074_v43, %v1075_v51 }
 0x202   : > { %1185 = vst [vmem:[%s2157_s25 + $0x20] sm:$0xff] %v1177_v55  ;;  %v1097_v38 = vadd.f32 %v1079_v44, %v1023_v48  ;;  %v922_v8 = vadd.f32 %v914_v12, %v2178_v21  ;;  %v1022_v19 = vadd.f32 %v1002_v23, %v948_v15  ;;  %v1116_v61 = vadd.f32 %v1894_v52, %v1106_v47 }
 0x203   : > { %1474 = vrcp.f32 %v1150_v22  ;;  %v921_v26 = vadd.f32 %v913_v46, %v2210_v6 }
 0x204   : > { %v1096_v50 = vadd.f32 %v1076_v30, %v1022_v19  ;;  %v1105_v5 = vadd.f32 %v1097_v38, %v922_v8  ;;  %v1124_v58 = vmax.f32 %v1116_v61, 0.0 }
 0x206   : > { %v1104_v35 = vadd.f32 %v1096_v50, %v921_v26  ;;  %v1115_v41 = vadd.f32 %v1894_v52, %v1105_v5  ;;  %v1309_v39 = vmul.f32 -1.442695, %v1124_v58 }
 0x208   : > { %v1114_v21 = vadd.f32 %v1894_v52, %v1104_v35  ;;  %v1123_v32 = vmax.f32 %v1115_v41, 0.0  ;;  %1476 = vpow2.f32 %v1309_v39  ;;  %v1491_v52 = vld [vmem:[%s1713_s24 + $0x8] sm:$0xff] }
 0x209   : > { %v1471_v17 = vpop.eup %1470 }
 0x20a   : > { %v1176_v62 = vmul.f32 %v1489_v16, %v1471_v17  ;;  %v1122_v27 = vmax.f32 %v1114_v21, 0.0  ;;  %v1308_v6 = vmul.f32 -1.442695, %v1123_v32 }
 0x20c   : > { %1184 = vst [vmem:[%s2157_s25 + $0x18] sm:$0xff] %v1176_v62  ;;  %v1307_v45 = vmul.f32 -1.442695, %v1122_v27  ;;  %1478 = vpow2.f32 %v1308_v6 }
 0x20d   : > { %v1473_v60 = vpop.eup %1472 }
 0x20e   : > { %v1175_v59 = vmul.f32 %v1490_v13, %v1473_v60  ;;  %1480 = vpow2.f32 %v1307_v45 }
 0x210   : > { %v1475_v49 = vpop.eup %1474  ;;  %1183 = vst [vmem:[%s2157_s25 + $0x10] sm:$0xff] %v1175_v59 }
 0x211   : > { %v1174_v48 = vmul.f32 %v1491_v52, %v1475_v49 }
 0x213   : > { %1182 = vst [vmem:[%s2157_s25 + $0x8] sm:$0xff] %v1174_v48 }
 0x215   : > { %v1477_v4 = vpop.eup %1476 }
 0x216   : > { %v1156_v53 = vadd.f32 1.0, %v1477_v4 }
 0x218   : > { %1482 = vrcp.f32 %v1156_v53 }
 0x219   : > { %v1479_v31 = vpop.eup %1478 }
 0x21a   : > { %v1155_v28 = vadd.f32 1.0, %v1479_v31 }
 0x21b   : > { %v1481_v1 = vpop.eup %1480 }
 0x21c   : > { %v1154_v42 = vadd.f32 1.0, %v1481_v1  ;;  %1484 = vrcp.f32 %v1155_v28 }
 0x21e   : > { %1486 = vrcp.f32 %v1154_v42 }
 0x225   : > { %v1483_v18 = vpop.eup %1482 }
 0x226   : > { %v1180_v57 = vmul.f32 %v1492_v40, %v1483_v18 }
 0x228   : > { %1188 = vst [vmem:[%s2157_s25 + $0x38] sm:$0xff] %v1180_v57 }
 0x229   : > { %v1485_v54 = vpop.eup %1484 }
 0x22a   : > { %v1179_v37 = vmul.f32 %v1493_v14, %v1485_v54 }
 0x22b   : > { %v1487_v2 = vpop.eup %1486 }
 0x22c   : > { %v1178_v9 = vmul.f32 %v1494_v24, %v1487_v2  ;;  %1187 = vst [vmem:[%s2157_s25 + $0x30] sm:$0xff] %v1179_v37 }
 0x22e   : > { %1186 = vst [vmem:[%s2157_s25 + $0x28] sm:$0xff] %v1178_v9 }
 0x22f PF: > { %s17_s18 = sadd.s32 1, %s1554_s18  }
 0x230   : > { %p14_p8 = scmp.ge.s32.totalorder %s17_s18, 4  }
 0x232   :  { %16 = sbr.rel (!%p14_p8) target bundleno = 2 (0x2), region = 85 }
 0x237   :  { %1210 = vsyncpa [#allocation4], 1 }
 0x238   :  { %1212 = vsyncpa [#allocation4 + $0x1], 1 }
 0x239   :  { %1213 = vsyncpa [#allocation6], 1 }

</bundles_post_ra>
